<compile_context>
chip_gen: v6e
topology: v6e:2x2x1
jax: 0.10.0
libtpu: 0.0.40
codegen_flags: <defaults>
</compile_context>

<pallas_src>
import jax
import jax.numpy as jnp
from jax.experimental import pallas as pl
from jax.experimental.pallas import tpu as pltpu

BN_EPS = 1e-5


# ----------------------------------------------------------------------------
# Pallas kernel: fused folded-BN + ReLU + 1x1-conv GEMM (+ conv bias)
# ----------------------------------------------------------------------------
def _make_transit_kernel(has_bias: bool):
    def kernel(x_ref, w_ref, s_ref, t_ref, *rest):
        if has_bias:
            b_ref, o_ref = rest
        else:
            (o_ref,) = rest
        # x_ref: (1, Cin, tn) f32, w_ref: (Cout, Cin) bf16,
        # s_ref/t_ref: (Cin, 1) f32 folded BN, b_ref: (Cout, 1) f32 conv bias.
        y = jnp.maximum(x_ref[0] * s_ref[...] + t_ref[...], 0.0)   # BN + ReLU (f32, VPU)
        out = jnp.dot(w_ref[...], y.astype(jnp.bfloat16),          # MXU: bf16 x bf16
                      preferred_element_type=jnp.float32)          #   -> f32 accumulate
        if has_bias:
            out = out + b_ref[...]
        o_ref[0] = out.astype(o_ref.dtype)
    return kernel


def transit_layer_forward(x, params, max_time_tile: int = 1024):
    """x: (B, C_in, T) f32  ->  (B, C_out, T) f32."""
    B, Cin, T = x.shape
    w = params["w"]                      # (Cout, Cin) bf16, BN-independent conv weight
    Cout = w.shape[0]
    s = params["bn_scale"]               # (Cin, 1) f32
    t = params["bn_shift"]               # (Cin, 1) f32
    bias = params["bias"]                # (Cout, 1) f32 or None
    has_bias = bias is not None

    # --- time tiling --------------------------------------------------------
    # Fixed large lane-dense tile (multiple of 128).  No padding, no
    # divisibility search: the ragged last tile is handled by Pallas masking
    # (safe because the 1x1 conv is strictly column-local along time).
    t_blocks = pl.cdiv(T, 128)                         # 128-lane chunks covering T
    tn_blocks = max(1, min(max_time_tile // 128, t_blocks))
    # v7x megacore occupancy: keep at least 2 grid steps when B / T are small
    # so both TensorCores get work.  Single-TC v5e/v6e are unaffected except in
    # that same tiny corner case (tile stays >= 128 lanes either way).
    while B * pl.cdiv(t_blocks, tn_blocks) < 2 and tn_blocks > 1:
        tn_blocks = pl.cdiv(tn_blocks, 2)
    tn = tn_blocks * 128
    grid = (B, pl.cdiv(T, tn))

    # --- VMEM budget ---------------------------------------------------------
    # Double-buffered x/out tiles + (conservatively double-counted) resident
    # weight + tiny BN/bias vectors, with 2x headroom for compiler scratch.
    # Clamped to 48 MiB so it always fits v7x's 64 MiB physical VMEM while
    # lifting v5e's 16 MiB default scoped limit when tiles are large.
    vmem_bytes = (2 * Cin * tn * 4            # x tiles (f32, double-buffered)
                  + 2 * Cout * tn * 4         # out tiles (f32, double-buffered)
                  + 2 * Cout * Cin * 2        # conv weight (bf16)
                  + 4 * Cin * 4 + 2 * Cout * 4)
    vmem_limit = int(min(48 << 20, max(2 * vmem_bytes, 16 << 20)))

    in_specs = [
        pl.BlockSpec((1, Cin, tn), lambda b, j: (b, 0, j)),   # activations (streamed)
        pl.BlockSpec((Cout, Cin), lambda b, j: (0, 0)),       # conv weight (resident)
        pl.BlockSpec((Cin, 1), lambda b, j: (0, 0)),          # folded-BN scale
        pl.BlockSpec((Cin, 1), lambda b, j: (0, 0)),          # folded-BN shift
    ]
    args = [x, w, s, t]
    if has_bias:
        in_specs.append(pl.BlockSpec((Cout, 1), lambda b, j: (0, 0)))
        args.append(bias)

    # Memory-bound cost hint: one read of x, one write of out, one read of the
    # (small) parameters; 2*B*Cout*Cin*T MACs on the MXU, no transcendentals.
    cost = pl.CostEstimate(
        flops=2 * B * Cout * Cin * T,
        transcendentals=0,
        bytes_accessed=(4 * B * Cin * T + 4 * B * Cout * T
                        + 2 * Cout * Cin + 8 * Cin + 4 * Cout),
    )

    return pl.pallas_call(
        _make_transit_kernel(has_bias),
        out_shape=jax.ShapeDtypeStruct((B, Cout, T), jnp.float32),
        grid=grid,
        in_specs=in_specs,
        out_specs=pl.BlockSpec((1, Cout, tn), lambda b, j: (b, 0, j)),
        compiler_params=pltpu.CompilerParams(
            dimension_semantics=("parallel", "parallel"),
            vmem_limit_bytes=vmem_limit),
        cost_estimate=cost,
    )(*args)


# ----------------------------------------------------------------------------
# Parameter preparation (one-time): fold BN, squeeze + bf16-cast the conv weight
# ----------------------------------------------------------------------------
def prepare_transit_params(conv_w, gamma, beta, mean, var, conv_b):
    """conv_w: (Cout, Cin, 1) torch Conv1d weight; BN stats per C_in channel."""
    scale = gamma / jnp.sqrt(var + BN_EPS)
    shift = beta - mean * scale
    Cout, Cin = conv_w.shape[0], conv_w.shape[1]
    return {
        "w": conv_w.reshape(Cout, Cin).astype(jnp.bfloat16),
        "bn_scale": scale.reshape(Cin, 1).astype(jnp.float32),
        "bn_shift": shift.reshape(Cin, 1).astype(jnp.float32),
        "bias": None if conv_b is None else conv_b.reshape(Cout, 1).astype(jnp.float32),
    }


def init_transit_layer(key, in_channels, out_channels, bias=True):
    ks = jax.random.split(key, 6)
    conv_w = 0.1 * jax.random.normal(ks[0], (out_channels, in_channels, 1), jnp.float32)
    gamma = 1.0 + 0.1 * jax.random.normal(ks[1], (in_channels,), jnp.float32)
    beta = 0.1 * jax.random.normal(ks[2], (in_channels,), jnp.float32)
    mean = 0.1 * jax.random.normal(ks[3], (in_channels,), jnp.float32)
    var = 1.0 + 0.1 * jax.random.uniform(ks[4], (in_channels,), jnp.float32)
    conv_b = 0.1 * jax.random.normal(ks[5], (out_channels,), jnp.float32) if bias else None
    return prepare_transit_params(conv_w, gamma, beta, mean, var, conv_b)


def transit_layer_reference(x, params):
    """Pure-JAX reference (f32) of ReLU(BN(x)) -> 1x1 conv, for a tolerance check."""
    y = jnp.maximum(x * params["bn_scale"][None] + params["bn_shift"][None], 0.0)
    out = jnp.einsum("oc,bct->bot", params["w"].astype(jnp.float32), y)
    if params["bias"] is not None:
        out = out + params["bias"][None]
    return out


if __name__ == "__main__":
    key = jax.random.PRNGKey(0)
    kx, kx2, kp = jax.random.split(key, 3)

    B, in_channels, out_channels = 2, 128, 64
    params = init_transit_layer(kp, in_channels, out_channels, bias=True)

    # Case 1: time length a multiple of 128 (full tiles).
    T1 = 256
    x1 = jax.random.normal(kx, (B, in_channels, T1), jnp.float32)
    out1 = jax.block_until_ready(transit_layer_forward(x1, params))
    assert out1.shape == (B, out_channels, T1), out1.shape
    assert bool(jnp.all(jnp.isfinite(out1)))
    ref1 = transit_layer_reference(x1, params)
    assert bool(jnp.allclose(out1, ref1, rtol=2e-2, atol=2e-2)), (
        float(jnp.max(jnp.abs(out1 - ref1))))

    # Case 2: ragged time length (exercises the masked last tile — no pad/slice).
    T2 = 200
    x2 = jax.random.normal(kx2, (B, in_channels, T2), jnp.float32)
    out2 = jax.block_until_ready(transit_layer_forward(x2, params))
    assert out2.shape == (B, out_channels, T2), out2.shape
    assert bool(jnp.all(jnp.isfinite(out2)))
    ref2 = transit_layer_reference(x2, params)
    assert bool(jnp.allclose(out2, ref2, rtol=2e-2, atol=2e-2)), (
        float(jnp.max(jnp.abs(out2 - ref2))))

    print("KERNEL_OK")
</pallas_src>

<mosaic_0001>
module attributes {stable_mosaic.version = 11 : i64} {
  func.func @kernel(%arg0: i32, %arg1: i32, %arg2: memref<1x128x256xf32, #tpu.memory_space<vmem>>, %arg3: memref<64x128xbf16, #tpu.memory_space<vmem>>, %arg4: memref<128x1xf32, #tpu.memory_space<vmem>>, %arg5: memref<128x1xf32, #tpu.memory_space<vmem>>, %arg6: memref<64x1xf32, #tpu.memory_space<vmem>>, %arg7: memref<1x64x256xf32, #tpu.memory_space<vmem>>) attributes {dimension_semantics = [#tpu.dimension_semantics<parallel>, #tpu.dimension_semantics<parallel>], iteration_bounds = array<i64: 2, 1>, scalar_prefetch = 0 : i64, scratch_operands = 0 : i64, tpu.core_type = #tpu.core_type<tc>, window_params = [{transform_indices = @transform_0, window_bounds = array<i64: 1, 128, 256>}, {pipeline_mode = #tpu.pipeline_mode<synchronous>, transform_indices = @transform_1, window_bounds = array<i64: 64, 128>}, {pipeline_mode = #tpu.pipeline_mode<synchronous>, transform_indices = @transform_2, window_bounds = array<i64: 128, 1>}, {pipeline_mode = #tpu.pipeline_mode<synchronous>, transform_indices = @transform_3, window_bounds = array<i64: 128, 1>}, {pipeline_mode = #tpu.pipeline_mode<synchronous>, transform_indices = @transform_4, window_bounds = array<i64: 64, 1>}, {transform_indices = @transform_5, window_bounds = array<i64: 1, 64, 256>}]} {
    %c0 = arith.constant 0 : index
    %c0_0 = arith.constant 0 : index
    %c0_1 = arith.constant 0 : index
    %0 = vector.load %arg2[%c0, %c0_0, %c0_1] : memref<1x128x256xf32, #tpu.memory_space<vmem>>, vector<1x128x256xf32>
    %1 = vector.shape_cast %0 : vector<1x128x256xf32> to vector<128x256xf32>
    %c0_2 = arith.constant 0 : index
    %c0_3 = arith.constant 0 : index
    %2 = vector.load %arg4[%c0_2, %c0_3] : memref<128x1xf32, #tpu.memory_space<vmem>>, vector<128x1xf32>
    %3 = vector.broadcast %2 : vector<128x1xf32> to vector<128x256xf32>
    %4 = arith.mulf %1, %3 : vector<128x256xf32>
    %c0_4 = arith.constant 0 : index
    %c0_5 = arith.constant 0 : index
    %5 = vector.load %arg5[%c0_4, %c0_5] : memref<128x1xf32, #tpu.memory_space<vmem>>, vector<128x1xf32>
    %6 = vector.broadcast %5 : vector<128x1xf32> to vector<128x256xf32>
    %7 = arith.addf %4, %6 : vector<128x256xf32>
    %cst = arith.constant 0.000000e+00 : f32
    %8 = vector.broadcast %cst : f32 to vector<128x256xf32>
    %9 = arith.maximumf %7, %8 : vector<128x256xf32>
    %c0_6 = arith.constant 0 : index
    %c0_7 = arith.constant 0 : index
    %10 = vector.load %arg3[%c0_6, %c0_7] : memref<64x128xbf16, #tpu.memory_space<vmem>>, vector<64x128xbf16>
    %11 = arith.truncf %9 : vector<128x256xf32> to vector<128x256xbf16>
    %cst_8 = arith.constant dense<0.000000e+00> : vector<64x256xf32>
    %12 = tpu.matmul %10, %11, %cst_8 {dimension_numbers = #tpu.dot_dimension_numbers<[1], [0], [0], [1], [0, 0, 1, 1], [], []>} : vector<64x128xbf16>, vector<128x256xbf16>, vector<64x256xf32> -> vector<64x256xf32>
    %c0_9 = arith.constant 0 : index
    %c0_10 = arith.constant 0 : index
    %13 = vector.load %arg6[%c0_9, %c0_10] : memref<64x1xf32, #tpu.memory_space<vmem>>, vector<64x1xf32>
    %14 = vector.broadcast %13 : vector<64x1xf32> to vector<64x256xf32>
    %15 = arith.addf %12, %14 : vector<64x256xf32>
    %c0_11 = arith.constant 0 : index
    %c0_12 = arith.constant 0 : index
    %c0_13 = arith.constant 0 : index
    %16 = vector.load %arg7[%c0_11, %c0_12, %c0_13] : memref<1x64x256xf32, #tpu.memory_space<vmem>>, vector<1x64x256xf32>
    %17 = vector.shape_cast %16 : vector<1x64x256xf32> to vector<64x256xf32>
    %18 = vector.shape_cast %15 : vector<64x256xf32> to vector<1x64x256xf32>
    tpu.vector_store %arg7[%c0_11, %c0_12, %c0_13], %18 {strides = array<i32>} : memref<1x64x256xf32, #tpu.memory_space<vmem>>, vector<1x64x256xf32>,
    return
  }
  func.func @transform_0(%arg0: i32, %arg1: i32) -> (i32, i32, i32) {
    %c0_i32 = arith.constant 0 : i32
    %c0_i32_0 = arith.constant 0 : i32
    return %arg0, %c0_i32, %arg1 : i32, i32, i32
  }
  func.func @transform_1(%arg0: i32, %arg1: i32) -> (i32, i32) {
    %c0_i32 = arith.constant 0 : i32
    %c0_i32_0 = arith.constant 0 : i32
    %c0_i32_1 = arith.constant 0 : i32
    return %c0_i32, %c0_i32_0 : i32, i32
  }
  func.func @transform_2(%arg0: i32, %arg1: i32) -> (i32, i32) {
    %c0_i32 = arith.constant 0 : i32
    %c0_i32_0 = arith.constant 0 : i32
    %c0_i32_1 = arith.constant 0 : i32
    return %c0_i32, %c0_i32_0 : i32, i32
  }
  func.func @transform_3(%arg0: i32, %arg1: i32) -> (i32, i32) {
    %c0_i32 = arith.constant 0 : i32
    %c0_i32_0 = arith.constant 0 : i32
    %c0_i32_1 = arith.constant 0 : i32
    return %c0_i32, %c0_i32_0 : i32, i32
  }
  func.func @transform_4(%arg0: i32, %arg1: i32) -> (i32, i32) {
    %c0_i32 = arith.constant 0 : i32
    %c0_i32_0 = arith.constant 0 : i32
    %c0_i32_1 = arith.constant 0 : i32
    return %c0_i32, %c0_i32_0 : i32, i32
  }
  func.func @transform_5(%arg0: i32, %arg1: i32) -> (i32, i32, i32) {
    %c0_i32 = arith.constant 0 : i32
    %c0_i32_0 = arith.constant 0 : i32
    return %arg0, %c0_i32, %arg1 : i32, i32, i32
  }
}

</mosaic_0001>

<bundles_post_ra>
// kernel: tpu_custom_call.1
= control target key start
LH: loop header
LB: loop body
LE: loop exit
PB: predicated region body
PF: predicated region fallthrough
CT: control target
= control target key end

     0   :  { %10 = vsyncpa [#allocation3], 0  ;;  %s1467_s0 = inlined_call_operand.hbm [shape: f32[2,128,256], index: 0, kind: input, shape index: {}]   ;;  %s1468_s1 = inlined_call_operand.vmem [shape: bf16[64,128], index: 1, kind: input, shape index: {}]   ;;  %s1469_s2 = inlined_call_operand.vmem [shape: f32[128,1], index: 2, kind: input, shape index: {}]   ;;  %s1470_s3 = inlined_call_operand.vmem [shape: f32[128,1], index: 3, kind: input, shape index: {}]   ;;  %s1471_s4 = inlined_call_operand.vmem [shape: f32[64,1], index: 4, kind: input, shape index: {}]   ;;  %s1472_s5 = inlined_call_operand.hbm [shape: f32[2,64,256], index: 5, kind: output, shape index: {}]  }
   0x1   :  { %12 = vsyncpa [#allocation3 + $0x1], 0 }
   0x2   :  { %13 = vsyncpa [#allocation4], 0 }
   0x3   :  { %15 = vsyncpa [#allocation4 + $0x1], 0  ;;  %s1129_s18 = smov 0   ;;  %s1131_s19 = smov 0  }
   0x4   :  { %s1133_s20 = smov 0   ;;  %s1135_s21 = smov 0  }
   0x5   :  { %s1137_s22 = smov 0   ;;  %s1139_s23 = smov 0  }
   0x6 LB: > { %s872_s24 = sadd.s32 4294967295, %s1090_s23   ;;  %s873_s25 = sadd.s32 4294967294, %s1090_s23   ;;  %s1090_s23 = sphi %s1139_s23, %s21_s23   ;;  %s1086_s22 = sphi %s1137_s22, %s1483_s22   ;;  %s1082_s21 = sphi %s1135_s21, %s1482_s21   ;;  %s1078_s20 = sphi %s1133_s20, %s1481_s20   ;;  %s1074_s19 = sphi %s1131_s19, %s1480_s19   ;;  %s1070_s18 = sphi %s1129_s18, %s1479_s18  }
   0x7   : > { %s33_s26 = sadd.s32 1, %s1086_s22  ;;  %s42_s27 = sadd.s32 1, %s1078_s20 }
   0x8   : > { %p35_p0 = scmp.ge.s32.totalorder %s33_s26, 2  ;;  %p49_p1 = scmp.ne.s32.totalorder %s1078_s20, %s1074_s19 }
   0x9   : > { %p50_p2 = scmp.eq.s32.totalorder %s1090_s23, 0  ;;  %p55_p3 = scmp.ne.s32.totalorder %s1074_s19, %s1070_s18 }
   0xa   : > { %s1485_s26 = smov (%p35_p0, %s33_s26), 0  ;;  %p56_p5 = scmp.eq.s32.totalorder %s872_s24, 0 }
   0xb   : > { %p1170_p4 = por %p50_p2, %p49_p1  ;;  %s37_s29 = ssub.s32 %s1086_s22, %s1485_s26 }
   0xc   : > { %p165_p6 = scmp.eq.s32.totalorder %s872_s24, 1  ;;  %p40_p7 = scmp.eq.s32.totalorder %s37_s29, 0 }
   0xd   : > { %p1176_p8 = por %p56_p5, %p55_p3  ;;  %p171_p10 = scmp.eq.s32.totalorder %s873_s25, 1 }
   0xe   : > { %p1180_p9 = por %p165_p6, %p49_p1  ;;  %p921_p13 = scmp.lt.s32.totalorder %s1090_s23, 2 }
   0xf   : > { %s1185_s7 = scalar_select %p40_p7, %s1078_s20, %s42_s27  }
  0x10   : > { %p1187_p11 = por %p171_p10, %p55_p3  ;;  %s203_s9 = sand.u32 1, %s1078_s20  }
  0x11   : > { %s876_s10 = sshll.u32 %s203_s9, 8  ;;  %s891_s11 = sshll.u32 %s1086_s22, 12 }
  0x12   : > { %s215_s14 = scalar_lea.hbm %s1467_s0, %s891_s11  ;;  %s207_s15 = scalar_lea.vmem [#allocation2], %s876_s10 }
  0x13   : > { %s216_s16 = sshll.u32 %s207_s15, 4  ;;  %p1200_p0 = pnand %p921_p13, %p1170_p4  ;;  %s217_s16 = int_to_ptr.vmem [resolvable:$true] %s216_s16 }
  0x14   : > { %p879_p1 = scmp.ge.s32.totalorder %s1090_s23, 1  ;;  %s204_s24 = scalar_lea.sflag [#allocation3], %s203_s9 }
  0x15   : > { %p984_p2 = pneg %p1200_p0  ;;  %s995_s25 = scalar_lea.vmem %s217_s16, 4096 }
  0x16   : > { %p996_p3 = scmp.ne.s32.totalorder %s217_s16, %s995_s25  ;;  %s1092_s27 = smov [#allocation2]  }
  0x17   : > { %s1000_s29 = sshll.u32 %s1092_s27, 4  ;;  %s1001_s29 = int_to_ptr.vmem [resolvable:$false] %s1000_s29 }
  0x18   : > { %p998_p5 = pnand %p996_p3, %p984_p2  ;;  %s1002_s10 = scalar_lea.vmem %s1001_s29, 8192 }
  0x19   : > { %p1003_p7 = scmp.lt.s32.totalorder %s217_s16, %s1001_s29  ;;  %p1004_p10 = scmp.lt.s32.totalorder %s1002_s10, %s995_s25 }
  0x1a   : > { %p999_p6 = pneg %p998_p5 }
  0x1b   : > { %p1005_p12 = por %p1004_p10, %p1003_p7 }
  0x1d   : > { %p1006_p4 = pnand %p1005_p12, %p999_p6 }
  0x1f   : > { %1009 = shalt.err (!%p1006_p4)
}
  0x20   : > { %s1093_s28 = smov 256   ;;  %s1094_s9 = smov 16  }
  0x21   : > { %916 = dma.hbm_to_vmem [thread:$0]  (!%p1200_p0), %s215_s14, 4096, %s217_s16, %s204_s24, %s1093_s28, %s1093_s28, %s1094_s9  }
  0x22   : > { %p224_p13 = scmp.lt.s32.totalorder %s1090_s23, 3 }
  0x24   : > { %p225_p2 = pnand %p879_p1, %p224_p13 }
  0x25   : > { %s1213_s11 = sand.u32 (!%p225_p2), 1, %s1074_s19  }
  0x26   : > { %228 = sbr.rel (%p225_p2) target bundleno = 464 (0x1d0), region = 40  ;;  %s880_s12 = sshll.u32 (!%p225_p2), %s1213_s11, 8 }
  0x27   : > { %s231_s13 = scalar_lea.sflag (!%p225_p2), [#allocation3], %s1213_s11  ;;  %s1217_s15 = scalar_lea.vmem (!%p225_p2), [#allocation2], %s880_s12 }
  0x2b   : > { %1061 = dma.done.wait (%p1176_p8), %s231_s13, 4096  }
  0x2c   : > { %1063 = vsyncadd (%p1176_p8), %s231_s13, 4294963200  ;;  %v1095_v0 = vmov 0   ;;  %v438_v1 = vld [vmem:[%s1470_s3 + $0x70] sm:$0xff]  ;;  %v439_v3 = vld [vmem:[%s1470_s3 + $0x78] sm:$0xff]  ;;  %s881_s28 = sshll.u32 %s1213_s11, 7  ;;  %s892_s12 = sshll.u32 %s1082_s21, 11 }
  0x2d   : > { %977 = vset.pattern.permute.xlu1 %v1095_v0  ;;  %976 = vset.pattern.permute.xlu0 %v1095_v0  ;;  %v310_v2 = vld [vmem:[%s1469_s2 + $0x70] sm:$0xff]  ;;  %v311_v4 = vld [vmem:[%s1469_s2 + $0x78] sm:$0xff]  ;;  %v309_v5 = vld [vmem:[%s1469_s2 + $0x68] sm:$0xff]  ;;  %s1394_s9 = scalar_lea.vmem [#allocation5], %s881_s28  ;;  %s770_s21 = scalar_lea.sflag [#allocation4], %s1213_s11 }
  0x2e   : > { %712 = vmatprep.mubr.bf16.mxu0 %v1095_v0  ;;  %732 = vmatprep.mubr.bf16.mxu1 %v1095_v0  ;;  %v308_v6 = vld [vmem:[%s1469_s2 + $0x60] sm:$0xff]  ;;  %v437_v7 = vld [vmem:[%s1470_s3 + $0x68] sm:$0xff]  ;;  %v307_v9 = vld [vmem:[%s1469_s2 + $0x58] sm:$0xff]  ;;  %s785_s13 = sshll.u32 %s1394_s9, 4  ;;  %s1096_s24 = smov [#allocation5]   ;;  %s1415_s13 = int_to_ptr.vmem [resolvable:$true] %s785_s13 }
  0x2f   : > { %512 = vperm.xlu1 %977, %v438_v1   ;;  %384 = vperm.xlu0 %976, %v310_v2   ;;  %v436_v8 = vld [vmem:[%s1470_s3 + $0x60] sm:$0xff]  ;;  %v306_v10 = vld [vmem:[%s1469_s2 + $0x50] sm:$0xff]  ;;  %v435_v11 = vld [vmem:[%s1470_s3 + $0x58] sm:$0xff]  ;;  %s1010_s17 = scalar_lea.vmem %s1415_s13, 2048  ;;  %s1014_s30 = sshll.u32 %s1096_s24, 4  ;;  %s1015_s30 = int_to_ptr.vmem [resolvable:$false] %s1014_s30 }
  0x30   : > { %v434_v12 = vld [vmem:[%s1470_s3 + $0x50] sm:$0xff]  ;;  %v305_v13 = vld [vmem:[%s1469_s2 + $0x48] sm:$0xff]  ;;  %v304_v14 = vld [vmem:[%s1469_s2 + $0x40] sm:$0xff]  ;;  %p1011_p8 = scmp.ne.s32.totalorder %s1415_s13, %s1010_s17  ;;  %s1016_s25 = scalar_lea.vmem %s1015_s30, 4096 }
  0x31   : > { %v433_v15 = vld [vmem:[%s1470_s3 + $0x48] sm:$0xff]  ;;  %v432_v16 = vld [vmem:[%s1470_s3 + $0x40] sm:$0xff]  ;;  %v303_v17 = vld [vmem:[%s1469_s2 + $0x38] sm:$0xff]  ;;  %p1017_p1 = scmp.lt.s32.totalorder %s1415_s13, %s1015_s30  ;;  %p1018_p3 = scmp.lt.s32.totalorder %s1016_s25, %s1010_s17 }
  0x32   : > { %v302_v18 = vld [vmem:[%s1469_s2 + $0x30] sm:$0xff]  ;;  %v431_v19 = vld [vmem:[%s1470_s3 + $0x38] sm:$0xff]  ;;  %v301_v21 = vld [vmem:[%s1469_s2 + $0x28] sm:$0xff]  ;;  %p1012_p12 = pnand %p1011_p8, %p1180_p9 }
  0x33   : > { %517 = vperm.xlu1 %977, %v439_v3   ;;  %389 = vperm.xlu0 %976, %v311_v4   ;;  %v430_v20 = vld [vmem:[%s1470_s3 + $0x30] sm:$0xff]  ;;  %v300_v22 = vld [vmem:[%s1469_s2 + $0x20] sm:$0xff]  ;;  %v429_v23 = vld [vmem:[%s1470_s3 + $0x28] sm:$0xff]  ;;  %p1019_p5 = por %p1018_p3, %p1017_p1 }
  0x34   : > { %v428_v24 = vld [vmem:[%s1470_s3 + $0x20] sm:$0xff]  ;;  %v299_v25 = vld [vmem:[%s1469_s2 + $0x18] sm:$0xff]  ;;  %v298_v26 = vld [vmem:[%s1469_s2 + $0x10] sm:$0xff]  ;;  %p1013_p0 = pneg %p1012_p12 }
  0x35   : > { %v427_v27 = vld [vmem:[%s1470_s3 + $0x18] sm:$0xff]  ;;  %v426_v28 = vld [vmem:[%s1470_s3 + $0x10] sm:$0xff]  ;;  %v297_v29 = vld [vmem:[%s1469_s2 + $0x8] sm:$0xff] }
  0x36   : > { %v296_v30 = vld [vmem:[%s1469_s2] sm:$0xff]  ;;  %v425_v31 = vld [vmem:[%s1470_s3 + $0x8] sm:$0xff]  ;;  %v611_v35 = vld [vmem:[%s1471_s4 + $0x18] sm:$0xff]  ;;  %p1020_p6 = pnand %p1019_p5, %p1013_p0 }
  0x37   : > { %379 = vperm.xlu1 %977, %v309_v5   ;;  %374 = vperm.xlu0 %976, %v308_v6   ;;  %v424_v32 = vld [vmem:[%s1470_s3] sm:$0xff]  ;;  %v609_v33 = vld [vmem:[%s1471_s4 + $0x8] sm:$0xff]  ;;  %v610_v36 = vld [vmem:[%s1471_s4 + $0x10] sm:$0xff] }
  0x38   : > { %v608_v34 = vld [vmem:[%s1471_s4] sm:$0xff]  ;;  %v613_v37 = vld [vmem:[%s1471_s4 + $0x28] sm:$0xff]  ;;  %v615_v39 = vld [vmem:[%s1471_s4 + $0x38] sm:$0xff] }
  0x39   : > { %v612_v38 = vld [vmem:[%s1471_s4 + $0x20] sm:$0xff]  ;;  %v614_v40 = vld [vmem:[%s1471_s4 + $0x30] sm:$0xff]  ;;  %v293_v42 = vld [vmem:[%s1217_s15 + $0xe8] sm:$0xff] }
  0x3a   : > { %v292_v41 = vld [vmem:[%s1217_s15 + $0xe0] sm:$0xff]  ;;  %v294_v47 = vld [vmem:[%s1217_s15 + $0xf0] sm:$0xff]  ;;  %v295_v48 = vld [vmem:[%s1217_s15 + $0xf8] sm:$0xff] }
  0x3b   : > { %507 = vperm.xlu1 %977, %v437_v7   ;;  %502 = vperm.xlu0 %976, %v436_v8   ;;  %v290_v57 = vld [vmem:[%s1217_s15 + $0xd0] sm:$0xff]  ;;  %v291_v59 = vld [vmem:[%s1217_s15 + $0xd8] sm:$0xff]  ;;  %v288_v61 = vld [vmem:[%s1217_s15 + $0xc0] sm:$0xff] }
  0x3c   : > { %v289_v62 = vld [vmem:[%s1217_s15 + $0xc8] sm:$0xff] }
  0x3f   : > { %369 = vperm.xlu1 %977, %v307_v9   ;;  %364 = vperm.xlu0 %976, %v306_v10  }
  0x43   : > { %497 = vperm.xlu1 %977, %v435_v11   ;;  %492 = vperm.xlu0 %976, %v434_v12  }
  0x47   : > { %359 = vperm.xlu1 %977, %v305_v13   ;;  %354 = vperm.xlu0 %976, %v304_v14  }
  0x4b   : > { %487 = vperm.xlu1 %977, %v433_v15   ;;  %482 = vperm.xlu0 %976, %v432_v16  }
  0x4f   : > { %349 = vperm.xlu1 %977, %v303_v17   ;;  %344 = vperm.xlu0 %976, %v302_v18  }
  0x53   : > { %477 = vperm.xlu1 %977, %v431_v19   ;;  %472 = vperm.xlu0 %976, %v430_v20   ;;  %v286_v20 = vld [vmem:[%s1217_s15 + $0xb0] sm:$0xff] }
  0x57   : > { %339 = vperm.xlu1 %977, %v301_v21   ;;  %334 = vperm.xlu0 %976, %v300_v22   ;;  %v287_v22 = vld [vmem:[%s1217_s15 + $0xb8] sm:$0xff] }
  0x5b   : > { %467 = vperm.xlu1 %977, %v429_v23   ;;  %462 = vperm.xlu0 %976, %v428_v24   ;;  %v284_v24 = vld [vmem:[%s1217_s15 + $0xa0] sm:$0xff] }
  0x5f   : > { %329 = vperm.xlu1 %977, %v299_v25   ;;  %324 = vperm.xlu0 %976, %v298_v26   ;;  %v285_v25 = vld [vmem:[%s1217_s15 + $0xa8] sm:$0xff] }
  0x63   : > { %457 = vperm.xlu1 %977, %v427_v27   ;;  %452 = vperm.xlu0 %976, %v426_v28  }
  0x67   : > { %319 = vperm.xlu1 %977, %v297_v29   ;;  %314 = vperm.xlu0 %976, %v296_v30  }
  0x6b   : > { %447 = vperm.xlu1 %977, %v425_v31   ;;  %442 = vperm.xlu0 %976, %v424_v32  }
  0x6f   : > { %623 = vperm.xlu1 %977, %v609_v33   ;;  %618 = vperm.xlu0 %976, %v608_v34  }
  0x73   : > { %633 = vperm.xlu1 %977, %v611_v35   ;;  %628 = vperm.xlu0 %976, %v610_v36  }
  0x77   : > { %643 = vperm.xlu1 %977, %v613_v37   ;;  %638 = vperm.xlu0 %976, %v612_v38  }
  0x7b   : > { %653 = vperm.xlu1 %977, %v615_v39   ;;  %648 = vperm.xlu0 %976, %v614_v40  }
  0xaa   : > { %v513_v43 = vpop.permute.xlu1 %512  ;;  %v385_v44 = vpop.permute.xlu0 %384 }
  0xab   : > { %v420_v45 = vmul.f32 %v385_v44, %v292_v41  ;;  %v421_v46 = vmul.f32 %v385_v44, %v293_v42  ;;  %v282_v42 = vld [vmem:[%s1217_s15 + $0x90] sm:$0xff]  ;;  %v283_v44 = vld [vmem:[%s1217_s15 + $0x98] sm:$0xff] }
  0xad   : > { %v548_v53 = vadd.f32 %v513_v43, %v420_v45  ;;  %v549_v54 = vadd.f32 %v513_v43, %v421_v46  ;;  %v280_v46 = vld [vmem:[%s1217_s15 + $0x80] sm:$0xff] }
  0xae   : > { %v518_v49 = vpop.permute.xlu1 %517  ;;  %v390_v50 = vpop.permute.xlu0 %389 }
  0xaf   : > { %v422_v51 = vmul.f32 %v390_v50, %v294_v47  ;;  %v423_v52 = vmul.f32 %v390_v50, %v295_v48  ;;  %v581_v63 = vmax.f32 %v549_v54, 0.0  ;;  %v580_v2 = vmax.f32 %v548_v53, 0.0  ;;  %v281_v47 = vld [vmem:[%s1217_s15 + $0x88] sm:$0xff] }
  0xb1   : > { %v550_v55 = vadd.f32 %v518_v49, %v422_v51  ;;  %v551_v56 = vadd.f32 %v518_v49, %v423_v52 }
  0xb2   : > { %v380_v58 = vpop.permute.xlu1 %379  ;;  %v375_v60 = vpop.permute.xlu0 %374 }
  0xb3   : > { %v583_v1 = vmax.f32 %v551_v56, 0.0  ;;  %v582_v3 = vmax.f32 %v550_v55, 0.0  ;;  %v418_v4 = vmul.f32 %v380_v58, %v290_v57  ;;  %v419_v5 = vmul.f32 %v380_v58, %v291_v59 }
  0xb4   : > { %v416_v6 = vmul.f32 %v375_v60, %v288_v61  ;;  %v417_v7 = vmul.f32 %v375_v60, %v289_v62 }
  0xb5   : > { %v607_v10 = vpack.c.bf16 %v583_v1, %v581_v63  ;;  %v606_v11 = vpack.c.bf16 %v582_v3, %v580_v2  ;;  %v278_v1 = vld [vmem:[%s1217_s15 + $0x70] sm:$0xff]  ;;  %v279_v3 = vld [vmem:[%s1217_s15 + $0x78] sm:$0xff] }
  0xb6   : > { %v508_v8 = vpop.permute.xlu1 %507  ;;  %v503_v9 = vpop.permute.xlu0 %502 }
  0xb7   : > { %v546_v12 = vadd.f32 %v508_v8, %v418_v4  ;;  %v547_v13 = vadd.f32 %v508_v8, %v419_v5  ;;  %v544_v14 = vadd.f32 %v503_v9, %v416_v6  ;;  %v545_v15 = vadd.f32 %v503_v9, %v417_v7  ;;  %680 = vmatprep.subr.bf16.mxu0 %v607_v10  ;;  %v276_v5 = vld [vmem:[%s1217_s15 + $0x60] sm:$0xff]  ;;  %v277_v6 = vld [vmem:[%s1217_s15 + $0x68] sm:$0xff] }
  0xb8   : > { %893 = vmatprep.subr.bf16.mxu1 %v607_v10  ;;  %681 = vmatpush1.bf16.msra.mxu0 %v606_v11 }
  0xb9   : > { %v578_v16 = vmax.f32 %v546_v12, 0.0  ;;  %v579_v17 = vmax.f32 %v547_v13, 0.0  ;;  %v576_v18 = vmax.f32 %v544_v14, 0.0  ;;  %v577_v19 = vmax.f32 %v545_v15, 0.0  ;;  %901 = vmatpush1.bf16.msra.mxu1 %v606_v11 }
  0xba   : > { %v370_v21 = vpop.permute.xlu1 %369  ;;  %v365_v23 = vpop.permute.xlu0 %364 }
  0xbb   : > { %v605_v26 = vpack.c.bf16 %v579_v17, %v577_v19  ;;  %v604_v27 = vpack.c.bf16 %v578_v16, %v576_v18  ;;  %v414_v28 = vmul.f32 %v370_v21, %v286_v20  ;;  %v415_v29 = vmul.f32 %v370_v21, %v287_v22 }
  0xbc   : > { %v412_v30 = vmul.f32 %v365_v23, %v284_v24  ;;  %v413_v31 = vmul.f32 %v365_v23, %v285_v25  ;;  %v274_v23 = vld [vmem:[%s1217_s15 + $0x50] sm:$0xff]  ;;  %v275_v25 = vld [vmem:[%s1217_s15 + $0x58] sm:$0xff] }
  0xbd   : > { %682 = vmatprep.subr.bf16.mxu0 %v605_v26  ;;  %894 = vmatprep.subr.bf16.mxu1 %v605_v26 }
  0xbe   : > { %v498_v32 = vpop.permute.xlu1 %497  ;;  %v493_v33 = vpop.permute.xlu0 %492  ;;  %683 = vmatpush1.bf16.msra.mxu0 %v604_v27  ;;  %902 = vmatpush1.bf16.msra.mxu1 %v604_v27  ;;  %v272_v27 = vld [vmem:[%s1217_s15 + $0x40] sm:$0xff] }
  0xbf   : > { %v542_v34 = vadd.f32 %v498_v32, %v414_v28  ;;  %v543_v35 = vadd.f32 %v498_v32, %v415_v29  ;;  %v540_v36 = vadd.f32 %v493_v33, %v412_v30  ;;  %v541_v37 = vadd.f32 %v493_v33, %v413_v31  ;;  %v273_v28 = vld [vmem:[%s1217_s15 + $0x48] sm:$0xff] }
  0xc1   : > { %v574_v38 = vmax.f32 %v542_v34, 0.0  ;;  %v575_v39 = vmax.f32 %v543_v35, 0.0  ;;  %v572_v40 = vmax.f32 %v540_v36, 0.0  ;;  %v573_v41 = vmax.f32 %v541_v37, 0.0 }
  0xc2   : > { %v360_v43 = vpop.permute.xlu1 %359  ;;  %v355_v45 = vpop.permute.xlu0 %354 }
  0xc3   : > { %v603_v48 = vpack.c.bf16 %v575_v39, %v573_v41  ;;  %v602_v49 = vpack.c.bf16 %v574_v38, %v572_v40  ;;  %v410_v50 = vmul.f32 %v360_v43, %v282_v42  ;;  %v411_v51 = vmul.f32 %v360_v43, %v283_v44 }
  0xc4   : > { %v408_v52 = vmul.f32 %v355_v45, %v280_v46  ;;  %v409_v53 = vmul.f32 %v355_v45, %v281_v47  ;;  %v270_v45 = vld [vmem:[%s1217_s15 + $0x30] sm:$0xff]  ;;  %v271_v47 = vld [vmem:[%s1217_s15 + $0x38] sm:$0xff] }
  0xc5   : > { %684 = vmatprep.subr.bf16.mxu0 %v603_v48  ;;  %895 = vmatprep.subr.bf16.mxu1 %v603_v48 }
  0xc6   : > { %v488_v54 = vpop.permute.xlu1 %487  ;;  %v483_v55 = vpop.permute.xlu0 %482  ;;  %685 = vmatpush1.bf16.msra.mxu0 %v602_v49  ;;  %903 = vmatpush1.bf16.msra.mxu1 %v602_v49  ;;  %v268_v49 = vld [vmem:[%s1217_s15 + $0x20] sm:$0xff] }
  0xc7   : > { %v538_v56 = vadd.f32 %v488_v54, %v410_v50  ;;  %v539_v57 = vadd.f32 %v488_v54, %v411_v51  ;;  %v536_v58 = vadd.f32 %v483_v55, %v408_v52  ;;  %v537_v59 = vadd.f32 %v483_v55, %v409_v53  ;;  %v269_v50 = vld [vmem:[%s1217_s15 + $0x28] sm:$0xff] }
  0xc9   : > { %v570_v60 = vmax.f32 %v538_v56, 0.0  ;;  %v571_v61 = vmax.f32 %v539_v57, 0.0  ;;  %v568_v62 = vmax.f32 %v536_v58, 0.0  ;;  %v569_v63 = vmax.f32 %v537_v59, 0.0 }
  0xca   : > { %v350_v2 = vpop.permute.xlu1 %349  ;;  %v345_v4 = vpop.permute.xlu0 %344 }
  0xcb   : > { %v601_v7 = vpack.c.bf16 %v571_v61, %v569_v63  ;;  %v600_v8 = vpack.c.bf16 %v570_v60, %v568_v62  ;;  %v406_v9 = vmul.f32 %v350_v2, %v278_v1  ;;  %v407_v10 = vmul.f32 %v350_v2, %v279_v3 }
  0xcc   : > { %v404_v11 = vmul.f32 %v345_v4, %v276_v5  ;;  %v405_v12 = vmul.f32 %v345_v4, %v277_v6  ;;  %v266_v4 = vld [vmem:[%s1217_s15 + $0x10] sm:$0xff]  ;;  %v267_v6 = vld [vmem:[%s1217_s15 + $0x18] sm:$0xff] }
  0xcd   : > { %686 = vmatprep.subr.bf16.mxu0 %v601_v7  ;;  %896 = vmatprep.subr.bf16.mxu1 %v601_v7 }
  0xce   : > { %v478_v13 = vpop.permute.xlu1 %477  ;;  %v473_v14 = vpop.permute.xlu0 %472  ;;  %687 = vmatpush1.bf16.msra.mxu0 %v600_v8  ;;  %904 = vmatpush1.bf16.msra.mxu1 %v600_v8  ;;  %v264_v8 = vld [vmem:[%s1217_s15] sm:$0xff] }
  0xcf   : > { %v534_v15 = vadd.f32 %v478_v13, %v406_v9  ;;  %v535_v16 = vadd.f32 %v478_v13, %v407_v10  ;;  %v532_v17 = vadd.f32 %v473_v14, %v404_v11  ;;  %v533_v18 = vadd.f32 %v473_v14, %v405_v12  ;;  %v265_v9 = vld [vmem:[%s1217_s15 + $0x8] sm:$0xff]  ;;  %s1413_s15 = scalar_lea.hbm %s1472_s5, %s892_s12 }
  0xd1   : > { %v566_v19 = vmax.f32 %v534_v15, 0.0  ;;  %v567_v20 = vmax.f32 %v535_v16, 0.0  ;;  %v564_v21 = vmax.f32 %v532_v17, 0.0  ;;  %v565_v22 = vmax.f32 %v533_v18, 0.0 }
  0xd2   : > { %v340_v24 = vpop.permute.xlu1 %339  ;;  %v335_v26 = vpop.permute.xlu0 %334 }
  0xd3   : > { %v599_v29 = vpack.c.bf16 %v567_v20, %v565_v22  ;;  %v598_v30 = vpack.c.bf16 %v566_v19, %v564_v21  ;;  %v402_v31 = vmul.f32 %v340_v24, %v274_v23  ;;  %v403_v32 = vmul.f32 %v340_v24, %v275_v25 }
  0xd4   : > { %v400_v33 = vmul.f32 %v335_v26, %v272_v27  ;;  %v401_v34 = vmul.f32 %v335_v26, %v273_v28  ;;  %v978_v28 = vld [vmem:[%s1468_s1] sm:$0xff]  }
  0xd5   : > { %688 = vmatprep.subr.bf16.mxu0 %v599_v29  ;;  %897 = vmatprep.subr.bf16.mxu1 %v599_v29  ;;  %v979_v29 = vld [vmem:[%s1468_s1 + $0x10] sm:$0xff]  }
  0xd6   : > { %v468_v35 = vpop.permute.xlu1 %467  ;;  %v463_v36 = vpop.permute.xlu0 %462  ;;  %689 = vmatpush1.bf16.msra.mxu0 %v598_v30  ;;  %905 = vmatpush1.bf16.msra.mxu1 %v598_v30  ;;  %v980_v30 = vld [vmem:[%s1468_s1 + $0x8] sm:$0xff]  }
  0xd7   : > { %v530_v37 = vadd.f32 %v468_v35, %v402_v31  ;;  %v531_v38 = vadd.f32 %v468_v35, %v403_v32  ;;  %v528_v39 = vadd.f32 %v463_v36, %v400_v33  ;;  %v529_v40 = vadd.f32 %v463_v36, %v401_v34  ;;  %v981_v31 = vld [vmem:[%s1468_s1 + $0x18] sm:$0xff]  }
  0xd9   : > { %v562_v41 = vmax.f32 %v530_v37, 0.0  ;;  %v563_v42 = vmax.f32 %v531_v38, 0.0  ;;  %v560_v43 = vmax.f32 %v528_v39, 0.0  ;;  %v561_v44 = vmax.f32 %v529_v40, 0.0 }
  0xda   : > { %v330_v46 = vpop.permute.xlu1 %329  ;;  %v325_v48 = vpop.permute.xlu0 %324 }
  0xdb   : > { %v597_v51 = vpack.c.bf16 %v563_v42, %v561_v44  ;;  %v596_v52 = vpack.c.bf16 %v562_v41, %v560_v43  ;;  %v398_v53 = vmul.f32 %v330_v46, %v270_v45  ;;  %v399_v54 = vmul.f32 %v330_v46, %v271_v47 }
  0xdc   : > { %v396_v55 = vmul.f32 %v325_v48, %v268_v49  ;;  %v397_v56 = vmul.f32 %v325_v48, %v269_v50 }
  0xdd   : > { %690 = vmatprep.subr.bf16.mxu0 %v597_v51  ;;  %898 = vmatprep.subr.bf16.mxu1 %v597_v51 }
  0xde   : > { %v458_v57 = vpop.permute.xlu1 %457  ;;  %v453_v58 = vpop.permute.xlu0 %452  ;;  %691 = vmatpush1.bf16.msra.mxu0 %v596_v52  ;;  %906 = vmatpush1.bf16.msra.mxu1 %v596_v52 }
  0xdf   : > { %v526_v59 = vadd.f32 %v458_v57, %v398_v53  ;;  %v527_v60 = vadd.f32 %v458_v57, %v399_v54  ;;  %v524_v61 = vadd.f32 %v453_v58, %v396_v55  ;;  %v525_v62 = vadd.f32 %v453_v58, %v397_v56 }
  0xe1   : > { %v558_v63 = vmax.f32 %v526_v59, 0.0  ;;  %v559_v1 = vmax.f32 %v527_v60, 0.0  ;;  %v556_v2 = vmax.f32 %v524_v61, 0.0  ;;  %v557_v3 = vmax.f32 %v525_v62, 0.0 }
  0xe2   : > { %v320_v5 = vpop.permute.xlu1 %319  ;;  %v315_v7 = vpop.permute.xlu0 %314 }
  0xe3   : > { %v595_v10 = vpack.c.bf16 %v559_v1, %v557_v3  ;;  %v594_v11 = vpack.c.bf16 %v558_v63, %v556_v2  ;;  %v394_v12 = vmul.f32 %v320_v5, %v266_v4  ;;  %v395_v13 = vmul.f32 %v320_v5, %v267_v6 }
  0xe4   : > { %v392_v14 = vmul.f32 %v315_v7, %v264_v8  ;;  %v393_v15 = vmul.f32 %v315_v7, %v265_v9 }
  0xe5   : > { %692 = vmatprep.subr.bf16.mxu0 %v595_v10  ;;  %899 = vmatprep.subr.bf16.mxu1 %v595_v10 }
  0xe6   : > { %v448_v16 = vpop.permute.xlu1 %447  ;;  %v443_v17 = vpop.permute.xlu0 %442  ;;  %693 = vmatpush1.bf16.msra.mxu0 %v594_v11  ;;  %907 = vmatpush1.bf16.msra.mxu1 %v594_v11 }
  0xe7   : > { %v522_v18 = vadd.f32 %v448_v16, %v394_v12  ;;  %v523_v19 = vadd.f32 %v448_v16, %v395_v13  ;;  %v520_v20 = vadd.f32 %v443_v17, %v392_v14  ;;  %v521_v21 = vadd.f32 %v443_v17, %v393_v15 }
  0xe9   : > { %v554_v22 = vmax.f32 %v522_v18, 0.0  ;;  %v555_v23 = vmax.f32 %v523_v19, 0.0  ;;  %v552_v24 = vmax.f32 %v520_v20, 0.0  ;;  %v553_v25 = vmax.f32 %v521_v21, 0.0 }
  0xea   : > { %v619_v32 = vpop.permute.xlu0 %618  ;;  %v624_v33 = vpop.permute.xlu1 %623 }
  0xeb   : > { %v593_v26 = vpack.c.bf16 %v555_v23, %v553_v25  ;;  %v592_v27 = vpack.c.bf16 %v554_v22, %v552_v24 }
  0xed   : > { %694 = vmatprep.subr.bf16.mxu0 %v593_v26  ;;  %900 = vmatprep.subr.bf16.mxu1 %v593_v26 }
  0xee   : > { %695 = vmatpush1.bf16.msra.mxu0 %v592_v27  ;;  %908 = vmatpush1.bf16.msra.mxu1 %v592_v27  ;;  %v629_v34 = vpop.permute.xlu0 %628  ;;  %v634_v35 = vpop.permute.xlu1 %633 }
  0xf1   : > { %713 = vmatmul.mubr.bf16.vlgmr.msra.gmra.mxu0 %v978_v28  ;;  %733 = vmatmul.mubr.bf16.vlgmr.msra.gmra.mxu1 %v979_v29 }
  0xf2   : > { %722 = vmatprep.mubr.bf16.mxu0 %v1095_v0  ;;  %742 = vmatprep.mubr.bf16.mxu1 %v1095_v0  ;;  %v639_v36 = vpop.permute.xlu0 %638  ;;  %v644_v42 = vpop.permute.xlu1 %643 }
  0xf6   : > { %v649_v51 = vpop.permute.xlu0 %648  ;;  %v654_v60 = vpop.permute.xlu1 %653 }
  0xf9   : > { %723 = vmatmul.mubr.bf16.gmra.mxu0 %v980_v30  ;;  %743 = vmatmul.mubr.bf16.gmra.mxu1 %v981_v31 }
 0x1b1   : > { %v714_v37 = vpop.f32.mrf.mxu0  ;;  %v734_v38 = vpop.f32.mrf.mxu1 }
 0x1b2   : > { %v715_v39 = vadd.f32 %v714_v37, %v619_v32  ;;  %v735_v0 = vadd.f32 %v734_v38, %v639_v36 }
 0x1b3   : > { %v716_v40 = vpop.f32.mrf.mxu0  ;;  %v736_v41 = vpop.f32.mrf.mxu1 }
 0x1b4   : > { %753 = vst [vmem:[%s1394_s9] sm:$0xff] %v715_v39  ;;  %761 = vst [vmem:[%s1394_s9 + $0x40] sm:$0xff] %v735_v0  ;;  %v717_v43 = vadd.f32 %v716_v40, %v619_v32  ;;  %v737_v44 = vadd.f32 %v736_v41, %v639_v36 }
 0x1b5   : > { %v718_v45 = vpop.f32.mrf.mxu0  ;;  %v738_v46 = vpop.f32.mrf.mxu1 }
 0x1b6   : > { %754 = vst [vmem:[%s1394_s9 + $0x8] sm:$0xff] %v717_v43  ;;  %762 = vst [vmem:[%s1394_s9 + $0x48] sm:$0xff] %v737_v44  ;;  %v719_v47 = vadd.f32 %v718_v45, %v624_v33  ;;  %v739_v48 = vadd.f32 %v738_v46, %v644_v42 }
 0x1b7   : > { %v720_v49 = vpop.f32.mrf.mxu0  ;;  %v740_v50 = vpop.f32.mrf.mxu1 }
 0x1b8   : > { %755 = vst [vmem:[%s1394_s9 + $0x10] sm:$0xff] %v719_v47  ;;  %763 = vst [vmem:[%s1394_s9 + $0x50] sm:$0xff] %v739_v48  ;;  %v721_v52 = vadd.f32 %v720_v49, %v624_v33  ;;  %v741_v53 = vadd.f32 %v740_v50, %v644_v42 }
 0x1b9   : > { %v724_v54 = vpop.f32.mrf.mxu0  ;;  %v744_v55 = vpop.f32.mrf.mxu1 }
 0x1ba   : > { %756 = vst [vmem:[%s1394_s9 + $0x18] sm:$0xff] %v721_v52  ;;  %764 = vst [vmem:[%s1394_s9 + $0x58] sm:$0xff] %v741_v53  ;;  %v725_v56 = vadd.f32 %v724_v54, %v629_v34  ;;  %v745_v57 = vadd.f32 %v744_v55, %v649_v51 }
 0x1bb   : > { %v726_v58 = vpop.f32.mrf.mxu0  ;;  %v746_v59 = vpop.f32.mrf.mxu1 }
 0x1bc   : > { %757 = vst [vmem:[%s1394_s9 + $0x20] sm:$0xff] %v725_v56  ;;  %765 = vst [vmem:[%s1394_s9 + $0x60] sm:$0xff] %v745_v57  ;;  %v727_v61 = vadd.f32 %v726_v58, %v629_v34  ;;  %v747_v62 = vadd.f32 %v746_v59, %v649_v51 }
 0x1bd   : > { %v728_v63 = vpop.f32.mrf.mxu0  ;;  %v748_v1 = vpop.f32.mrf.mxu1 }
 0x1be   : > { %758 = vst [vmem:[%s1394_s9 + $0x28] sm:$0xff] %v727_v61  ;;  %766 = vst [vmem:[%s1394_s9 + $0x68] sm:$0xff] %v747_v62  ;;  %v729_v2 = vadd.f32 %v728_v63, %v634_v35  ;;  %v749_v3 = vadd.f32 %v748_v1, %v654_v60 }
 0x1bf   : > { %v730_v4 = vpop.f32.mrf.mxu0  ;;  %v750_v5 = vpop.f32.mrf.mxu1 }
 0x1c0   : > { %759 = vst [vmem:[%s1394_s9 + $0x30] sm:$0xff] %v729_v2  ;;  %767 = vst [vmem:[%s1394_s9 + $0x70] sm:$0xff] %v749_v3  ;;  %v731_v6 = vadd.f32 %v730_v4, %v634_v35  ;;  %v751_v7 = vadd.f32 %v750_v5, %v654_v60 }
 0x1c2   : > { %760 = vst [vmem:[%s1394_s9 + $0x38] sm:$0xff] %v731_v6  ;;  %768 = vst [vmem:[%s1394_s9 + $0x78] sm:$0xff] %v751_v7 }
 0x1c3   : > { %1023 = shalt.err (!%p1020_p6)
}
 0x1c4   : > { %s1024_s27 = scalar_lea.hbm %s1413_s15, 2048  ;;  %s1028_s28 = scalar_lea.hbm %s1472_s5, 4096 }
 0x1c5   : > { %p1025_p7 = scmp.ne.s32.totalorder %s1413_s15, %s1024_s27  ;;  %p1029_p13 = scmp.lt.s32.totalorder %s1413_s15, %s1472_s5 }
 0x1c6   : > { %p1030_p2 = scmp.lt.s32.totalorder %s1028_s28, %s1024_s27 }
 0x1c7   : > { %p1026_p10 = pnand %p1025_p7, %p1180_p9 }
 0x1c8   : > { %p1031_p8 = por %p1030_p2, %p1029_p13 }
 0x1c9   : > { %p1027_p4 = pneg %p1026_p10 }
 0x1cb   : > { %p1032_p12 = pnand %p1031_p8, %p1027_p4 }
 0x1cd   : > { %1035 = shalt.err (!%p1032_p12)
}
 0x1ce   : > { %s1097_s14 = smov 256   ;;  %s1098_s16 = smov 16  }
 0x1cf   : > { %911 = dma.vmem_to_hbm [thread:$0]  (%p1180_p9), %s1415_s13, 2048, %s1413_s15, %s770_s21, %s1097_s14, %s1097_s14, %s1098_s16  }
 0x1d0 PF: > { %s800_s17 = sand.u32 1, %s1070_s18   ;;  %p1478_p0 = scmp.ge.s32.totalorder %s1090_s23, 2 }
 0x1d1   : > { %s801_s24 = scalar_lea.sflag [#allocation4], %s800_s17 }
 0x1d2   : > { %p918_p1 = pnand %p1478_p0, %p1187_p11 }
 0x1d4   : > { %p919_p3 = pneg %p918_p1 }
 0x1d6   : > { %1065 = dma.done.wait (%p919_p3), %s801_s24, 2048  }
 0x1d7   : > { %1067 = vsyncadd (%p919_p3), %s801_s24, 4294965248  ;;  %s21_s23 = sadd.s32 1, %s1090_s23   ;;  %s1479_s18 = smov %s1074_s19 }
 0x1d8   : > { %p18_p5 = scmp.ge.s32.totalorder %s21_s23, 4   ;;  %s1480_s19 = smov %s1078_s20 }
 0x1d9   : > { %s1481_s20 = smov %s1185_s7  ;;  %s1482_s21 = smov %s1086_s22 }
 0x1da   : > { %s1483_s22 = smov %s1485_s26  ;;  %20 = sbr.rel (!%p18_p5) target bundleno = 6 (0x6), region = 85 }
 0x1df   :  { %806 = vsyncpa [#allocation3], 1 }
 0x1e0   :  { %808 = vsyncpa [#allocation3 + $0x1], 1 }
 0x1e1   :  { %809 = vsyncpa [#allocation4], 1 }
 0x1e2   :  { %811 = vsyncpa [#allocation4 + $0x1], 1 }

</bundles_post_ra>
